<compile_context>
chip_gen: v6e
topology: v6e:2x2x1
jax: 0.10.0
libtpu: 0.0.40
codegen_flags: <defaults>
</compile_context>

<pallas_src>
import jax
import jax.numpy as jnp
from jax import lax
from jax.experimental import pallas as pl
from jax.experimental.pallas import tpu as pltpu


def _round_up(x, m):
    return ((x + m - 1) // m) * m


def mle_loss(last_hidden_states, logits, input_ids, labels):
    """Mirror of MLELoss.forward; last_hidden_states / input_ids are unused."""
    del last_hidden_states, input_ids
    B, S, V = logits.shape
    N = B * S

    # --- static tiling decisions -------------------------------------------------
    R_TILE = min(256, _round_up(N, 8))           # rows per grid step (sublane-aligned)
    V_TILE = V if V <= 4096 else 4096            # lane-dense vocab tile (mult. of 128)
    n_r = pl.cdiv(N, R_TILE)
    n_v = pl.cdiv(V, V_TILE)
    N_pad = n_r * R_TILE
    ragged_v = (V % V_TILE) != 0                 # static: mask OOB vocab columns

    logits_flat = logits.reshape(N, V)
    labels_col = labels.reshape(N, 1).astype(jnp.int32)
    if N_pad != N:
        # Pad labels (tiny) with ignore_index so OOB logits rows are masked out.
        labels_col = jnp.pad(labels_col, ((0, N_pad - N), (0, 0)),
                             constant_values=-100)

    neg_init = float(jnp.finfo(jnp.float32).min)          # running-max init (avoid -inf-(-inf))
    dtype_min = float(jnp.finfo(logits.dtype).min)        # mask value for ragged vocab tile

    # --- kernel -------------------------------------------------------------------
    def kernel(logits_ref, labels_ref, tok_ref, m_ref, l_ref, t_ref):
        vi = pl.program_id(1)

        @pl.when(vi == 0)
        def _init():
            m_ref[...] = jnp.full_like(m_ref, neg_init)
            l_ref[...] = jnp.zeros_like(l_ref)
            t_ref[...] = jnp.zeros_like(t_ref)

        x = logits_ref[...]                      # [R, Vt], native dtype (no full f32 copy kept)
        lbl = labels_ref[...]                    # [R, 1] int32

        col = lax.broadcasted_iota(jnp.int32, x.shape, 1) + vi * V_TILE
        if ragged_v:                             # static flag: only pay when last tile is ragged
            x = jnp.where(col < V, x, dtype_min)

        # Target logit for this vocab tile (exactly one match across all tiles).
        # TODO(synk): labels outside [0, V) that are not -100 silently contribute 0
        #             (no match) rather than erroring like PyTorch.
        onehot = col == lbl                      # [R, Vt]
        t_ref[...] += jnp.sum(jnp.where(onehot, x, jnp.zeros_like(x)),
                              axis=-1, keepdims=True).astype(jnp.float32)

        # Online (streaming) logsumexp across vocab tiles.
        m_prev = m_ref[...]
        m_tile = jnp.max(x, axis=-1, keepdims=True).astype(jnp.float32)
        m_new = jnp.maximum(m_prev, m_tile)
        alpha = jnp.exp(m_prev - m_new)
        p = jnp.exp(x - m_new)                   # promotes to f32 via m_new (keep f32 exp for accuracy)
        l_ref[...] = l_ref[...] * alpha + jnp.sum(p, axis=-1, keepdims=True)
        m_ref[...] = m_new

        @pl.when(vi == pl.num_programs(1) - 1)
        def _finalize():
            lse = m_ref[...] + jnp.log(l_ref[...])          # [R, 1]
            valid = lbl != -100
            tok_ref[...] = jnp.where(valid, lse - t_ref[...], 0.0)

    # --- pallas_call ---------------------------------------------------------------
    grid_spec = pltpu.PrefetchScalarGridSpec(
        num_scalar_prefetch=0,
        grid=(n_r, n_v),
        in_specs=[
            pl.BlockSpec((R_TILE, V_TILE), lambda r, v: (r, v)),
            # Labels: tiny side input; block index constant across the vocab axis,
            # so it is only re-fetched when the row tile changes.
            pl.BlockSpec((R_TILE, 1), lambda r, v: (r, 0)),
        ],
        out_specs=pl.BlockSpec((R_TILE, 1), lambda r, v: (r, 0)),
        scratch_shapes=[
            pltpu.VMEM((R_TILE, 1), jnp.float32),   # running max m
            pltpu.VMEM((R_TILE, 1), jnp.float32),   # running sum-exp l
            pltpu.VMEM((R_TILE, 1), jnp.float32),   # running target logit
        ],
    )

    bytes_accessed = (N * V * jnp.dtype(logits.dtype).itemsize
                      + N_pad * 4      # labels
                      + N_pad * 4)     # per-token loss output
    cost = pl.CostEstimate(
        flops=6 * N * V,
        transcendentals=N * V,
        bytes_accessed=bytes_accessed,
    )

    tok = pl.pallas_call(
        kernel,
        out_shape=jax.ShapeDtypeStruct((N_pad, 1), jnp.float32),
        grid_spec=grid_spec,
        compiler_params=pltpu.CompilerParams(
            dimension_semantics=("parallel", "arbitrary"),
            vmem_limit_bytes=48 * 1024 * 1024,
        ),
        cost_estimate=cost,
    )(logits_flat, labels_col)

    # Cheap final reduction in the wrapper (matches torch: per-row sum / max(valid,1), mean over B).
    tok = tok[:N, 0].reshape(B, S)
    valid_len = jnp.maximum((labels != -100).astype(jnp.float32).sum(-1), 1.0)
    loss = (tok.sum(-1) / valid_len).mean()
    return loss, loss * 0.0


def _reference(logits, labels):
    """Pure-JAX reference of the PyTorch forward, for verification."""
    logits = logits.astype(jnp.float32)
    lse = jax.nn.logsumexp(logits, axis=-1)                       # [B,S]
    safe_lab = jnp.where(labels == -100, 0, labels)
    tgt = jnp.take_along_axis(logits, safe_lab[..., None], axis=-1)[..., 0]
    valid = labels != -100
    tok = jnp.where(valid, lse - tgt, 0.0)
    per_b = tok.sum(-1) / jnp.maximum(valid.astype(jnp.float32).sum(-1), 1.0)
    m = per_b.mean()
    return m, m * 0.0


if __name__ == "__main__":
    B, S, V, H = 2, 8, 128, 32
    vocab_size, pad_token_id = V, 0

    key = jax.random.PRNGKey(0)
    k1, k2, k3, k4 = jax.random.split(key, 4)

    last_hidden_states = jax.random.normal(k1, (B, S, H), dtype=jnp.float32)
    logits = jax.random.normal(k2, (B, S, V), dtype=jnp.float32)
    input_ids = jax.random.randint(k3, (B, S), 0, vocab_size, dtype=jnp.int32)
    labels = jax.random.randint(k4, (B, S), 0, vocab_size, dtype=jnp.int32)
    # Mark the tail of each sequence as ignored (like padded label positions).
    pos = jnp.arange(S)[None, :]
    labels = jnp.where(pos >= jnp.array([[6], [5]]), -100, labels)

    loss, zero = mle_loss(last_hidden_states, logits, input_ids, labels)
    loss = jax.block_until_ready(loss)
    zero = jax.block_until_ready(zero)

    ref_loss, ref_zero = _reference(logits, labels)
    assert jnp.allclose(loss, ref_loss, rtol=1e-5, atol=1e-5), (loss, ref_loss)
    assert jnp.allclose(zero, 0.0, atol=1e-6)

    print("KERNEL_OK")
</pallas_src>

<mosaic_0001>
module attributes {stable_mosaic.version = 11 : i64} {
  func.func @kernel(%arg0: i32, %arg1: i32, %arg2: memref<16x128xf32, #tpu.memory_space<vmem>>, %arg3: memref<16x1xi32, #tpu.memory_space<vmem>>, %arg4: memref<16x1xf32, #tpu.memory_space<vmem>>, %arg5: memref<16x1xf32, #tpu.memory_space<vmem>>, %arg6: memref<16x1xf32, #tpu.memory_space<vmem>>, %arg7: memref<16x1xf32, #tpu.memory_space<vmem>>) attributes {dimension_semantics = [#tpu.dimension_semantics<parallel>, #tpu.dimension_semantics<arbitrary>], iteration_bounds = array<i64: 1, 1>, scalar_prefetch = 0 : i64, scratch_operands = 3 : i64, tpu.core_type = #tpu.core_type<tc>, window_params = [{transform_indices = @transform_0, window_bounds = array<i64: 16, 128>}, {transform_indices = @transform_1, window_bounds = array<i64: 16, 1>}, {transform_indices = @transform_2, window_bounds = array<i64: 16, 1>}]} {
    %c0_i32 = arith.constant 0 : i32
    %0 = arith.cmpi eq, %arg1, %c0_i32 : i32
    %1 = arith.extui %0 : i1 to i32
    %c0_i32_0 = arith.constant 0 : i32
    %2 = arith.cmpi ne, %1, %c0_i32_0 : i32
    scf.if %2 {
      %cst_21 = arith.constant -3.40282347E+38 : f32
      %37 = vector.broadcast %cst_21 : f32 to vector<16x1xf32>
      %c0_22 = arith.constant 0 : index
      %c0_23 = arith.constant 0 : index
      %38 = vector.load %arg5[%c0_22, %c0_23] : memref<16x1xf32, #tpu.memory_space<vmem>>, vector<16x1xf32>
      tpu.vector_store %arg5[%c0_22, %c0_23], %37 {strides = array<i32>} : memref<16x1xf32, #tpu.memory_space<vmem>>, vector<16x1xf32>,
      %cst_24 = arith.constant 0.000000e+00 : f32
      %39 = vector.broadcast %cst_24 : f32 to vector<16x1xf32>
      %c0_25 = arith.constant 0 : index
      %c0_26 = arith.constant 0 : index
      %40 = vector.load %arg6[%c0_25, %c0_26] : memref<16x1xf32, #tpu.memory_space<vmem>>, vector<16x1xf32>
      tpu.vector_store %arg6[%c0_25, %c0_26], %39 {strides = array<i32>} : memref<16x1xf32, #tpu.memory_space<vmem>>, vector<16x1xf32>,
      %cst_27 = arith.constant 0.000000e+00 : f32
      %41 = vector.broadcast %cst_27 : f32 to vector<16x1xf32>
      %c0_28 = arith.constant 0 : index
      %c0_29 = arith.constant 0 : index
      %42 = vector.load %arg7[%c0_28, %c0_29] : memref<16x1xf32, #tpu.memory_space<vmem>>, vector<16x1xf32>
      tpu.vector_store %arg7[%c0_28, %c0_29], %41 {strides = array<i32>} : memref<16x1xf32, #tpu.memory_space<vmem>>, vector<16x1xf32>,
    } else {
    }
    %c0 = arith.constant 0 : index
    %c0_1 = arith.constant 0 : index
    %3 = vector.load %arg2[%c0, %c0_1] : memref<16x128xf32, #tpu.memory_space<vmem>>, vector<16x128xf32>
    %c0_2 = arith.constant 0 : index
    %c0_3 = arith.constant 0 : index
    %4 = vector.load %arg3[%c0_2, %c0_3] : memref<16x1xi32, #tpu.memory_space<vmem>>, vector<16x1xi32>
    %5 = tpu.iota {dimensions = array<i32: 1>} : vector<16x128xi32>
    %c128_i32 = arith.constant 128 : i32
    %6 = arith.muli %arg1, %c128_i32 : i32
    %7 = vector.broadcast %6 : i32 to vector<16x128xi32>
    %8 = arith.addi %5, %7 : vector<16x128xi32>
    %9 = vector.broadcast %4 : vector<16x1xi32> to vector<16x128xi32>
    %10 = arith.cmpi eq, %8, %9 : vector<16x128xi32>
    %c0_4 = arith.constant 0 : index
    %c0_5 = arith.constant 0 : index
    %11 = vector.load %arg7[%c0_4, %c0_5] : memref<16x1xf32, #tpu.memory_space<vmem>>, vector<16x1xf32>
    %cst = arith.constant 0.000000e+00 : f32
    %12 = vector.broadcast %cst : f32 to vector<16x128xf32>
    %13 = arith.select %10, %3, %12 : vector<16x128xi1>, vector<16x128xf32>
    %cst_6 = arith.constant dense<0.000000e+00> : vector<16xf32>
    %14 = vector.multi_reduction <add>, %13, %cst_6 [1] : vector<16x128xf32> to vector<16xf32>
    %15 = vector.shape_cast %14 : vector<16xf32> to vector<16x1xf32>
    %16 = arith.addf %11, %15 : vector<16x1xf32>
    %c0_7 = arith.constant 0 : index
    %c0_8 = arith.constant 0 : index
    %17 = vector.load %arg7[%c0_7, %c0_8] : memref<16x1xf32, #tpu.memory_space<vmem>>, vector<16x1xf32>
    tpu.vector_store %arg7[%c0_7, %c0_8], %16 {strides = array<i32>} : memref<16x1xf32, #tpu.memory_space<vmem>>, vector<16x1xf32>,
    %c0_9 = arith.constant 0 : index
    %c0_10 = arith.constant 0 : index
    %18 = vector.load %arg5[%c0_9, %c0_10] : memref<16x1xf32, #tpu.memory_space<vmem>>, vector<16x1xf32>
    %cst_11 = arith.constant dense<0xFF800000> : vector<16xf32>
    %19 = vector.multi_reduction <maximumf>, %3, %cst_11 [1] : vector<16x128xf32> to vector<16xf32>
    %20 = vector.shape_cast %19 : vector<16xf32> to vector<16x1xf32>
    %21 = arith.maximumf %18, %20 : vector<16x1xf32>
    %22 = arith.subf %18, %21 : vector<16x1xf32>
    %23 = math.exp %22 : vector<16x1xf32>
    %24 = vector.broadcast %21 : vector<16x1xf32> to vector<16x128xf32>
    %25 = arith.subf %3, %24 : vector<16x128xf32>
    %26 = math.exp %25 : vector<16x128xf32>
    %c0_12 = arith.constant 0 : index
    %c0_13 = arith.constant 0 : index
    %27 = vector.load %arg6[%c0_12, %c0_13] : memref<16x1xf32, #tpu.memory_space<vmem>>, vector<16x1xf32>
    %28 = arith.mulf %27, %23 : vector<16x1xf32>
    %cst_14 = arith.constant dense<0.000000e+00> : vector<16xf32>
    %29 = vector.multi_reduction <add>, %26, %cst_14 [1] : vector<16x128xf32> to vector<16xf32>
    %30 = vector.shape_cast %29 : vector<16xf32> to vector<16x1xf32>
    %31 = arith.addf %28, %30 : vector<16x1xf32>
    %c0_15 = arith.constant 0 : index
    %c0_16 = arith.constant 0 : index
    %32 = vector.load %arg6[%c0_15, %c0_16] : memref<16x1xf32, #tpu.memory_space<vmem>>, vector<16x1xf32>
    tpu.vector_store %arg6[%c0_15, %c0_16], %31 {strides = array<i32>} : memref<16x1xf32, #tpu.memory_space<vmem>>, vector<16x1xf32>,
    %c0_17 = arith.constant 0 : index
    %c0_18 = arith.constant 0 : index
    %33 = vector.load %arg5[%c0_17, %c0_18] : memref<16x1xf32, #tpu.memory_space<vmem>>, vector<16x1xf32>
    tpu.vector_store %arg5[%c0_17, %c0_18], %21 {strides = array<i32>} : memref<16x1xf32, #tpu.memory_space<vmem>>, vector<16x1xf32>,
    %c0_i32_19 = arith.constant 0 : i32
    %34 = arith.cmpi eq, %arg1, %c0_i32_19 : i32
    %35 = arith.extui %34 : i1 to i32
    %c0_i32_20 = arith.constant 0 : i32
    %36 = arith.cmpi ne, %35, %c0_i32_20 : i32
    scf.if %36 {
      %c0_21 = arith.constant 0 : index
      %c0_22 = arith.constant 0 : index
      %37 = vector.load %arg5[%c0_21, %c0_22] : memref<16x1xf32, #tpu.memory_space<vmem>>, vector<16x1xf32>
      %c0_23 = arith.constant 0 : index
      %c0_24 = arith.constant 0 : index
      %38 = vector.load %arg6[%c0_23, %c0_24] : memref<16x1xf32, #tpu.memory_space<vmem>>, vector<16x1xf32>
      %39 = math.log %38 : vector<16x1xf32>
      %40 = arith.addf %37, %39 : vector<16x1xf32>
      %c-100_i32 = arith.constant -100 : i32
      %41 = vector.broadcast %c-100_i32 : i32 to vector<16x1xi32>
      %42 = arith.cmpi ne, %4, %41 : vector<16x1xi32>
      %c0_25 = arith.constant 0 : index
      %c0_26 = arith.constant 0 : index
      %43 = vector.load %arg7[%c0_25, %c0_26] : memref<16x1xf32, #tpu.memory_space<vmem>>, vector<16x1xf32>
      %44 = arith.subf %40, %43 : vector<16x1xf32>
      %cst_27 = arith.constant 0.000000e+00 : f32
      %45 = vector.broadcast %cst_27 : f32 to vector<16x1xf32>
      %46 = arith.select %42, %44, %45 : vector<16x1xi1>, vector<16x1xf32>
      %c0_28 = arith.constant 0 : index
      %c0_29 = arith.constant 0 : index
      %47 = vector.load %arg4[%c0_28, %c0_29] : memref<16x1xf32, #tpu.memory_space<vmem>>, vector<16x1xf32>
      tpu.vector_store %arg4[%c0_28, %c0_29], %46 {strides = array<i32>} : memref<16x1xf32, #tpu.memory_space<vmem>>, vector<16x1xf32>,
    } else {
    }
    return
  }
  func.func @transform_0(%arg0: i32, %arg1: i32) -> (i32, i32) {
    %c0_i32 = arith.constant 0 : i32
    return %arg0, %arg1 : i32, i32
  }
  func.func @transform_1(%arg0: i32, %arg1: i32) -> (i32, i32) {
    %c0_i32 = arith.constant 0 : i32
    %c0_i32_0 = arith.constant 0 : i32
    return %arg0, %c0_i32 : i32, i32
  }
  func.func @transform_2(%arg0: i32, %arg1: i32) -> (i32, i32) {
    %c0_i32 = arith.constant 0 : i32
    %c0_i32_0 = arith.constant 0 : i32
    return %arg0, %c0_i32 : i32, i32
  }
}

</mosaic_0001>

<bundles_post_ra>
// kernel: tpu_custom_call.1
= control target key start
LH: loop header
LB: loop body
LE: loop exit
PB: predicated region body
PF: predicated region fallthrough
CT: control target
= control target key end

     0   :  { %vm15_vm0 = vcmask 7168   ;;  %v140_v1 = vmov -3.4028235e+38   ;;  %v141_v3 = vmov 0   ;;  %v142_v4 = vmov 0.0   ;;  %s198_s0 = inlined_call_operand.vmem [shape: f32[16,128], index: 0, kind: input, shape index: {}]   ;;  %s199_s1 = inlined_call_operand.vmem [shape: s32[16,1], index: 1, kind: input, shape index: {}]   ;;  %s200_s2 = inlined_call_operand.vmem [shape: f32[16,1], index: 2, kind: output, shape index: {}]  }
   0x1   :  { %v22_v0 = vld [vmem:[%s198_s0] sm:$0xff]  ;;  %16 = vst.msk [vmem:[#allocation2] sm:$0xff] %vm15_vm0, %v140_v1  ;;  %17 = vst.msk [vmem:[#allocation2 + $0x8] sm:$0xff] %vm15_vm0, %v140_v1  ;;  %v23_v2 = vld [vmem:[%s198_s0 + $0x8] sm:$0xff]  ;;  %126 = vset.pattern.permute.xlu1 %v141_v3  ;;  %127 = vset.pattern.permute.xlu0 %v141_v3  ;;  %v26_v15 = vlaneseq }
   0x2   :  { %54 = vmax.xlane.f32.xlu0 %v22_v0  ;;  %18 = vst.msk [vmem:[#allocation3] sm:$0xff] %vm15_vm0, %v142_v4  ;;  %19 = vst.msk [vmem:[#allocation3 + $0x8] sm:$0xff] %vm15_vm0, %v142_v4  ;;  %v173_v5 = vld [vmem:[%s199_s1] sm:$0xff]  ;;  %v181_v14 = vld [vmem:[%s199_s1 + $0x8] sm:$0xff] }
   0x3   :  { %20 = vst.msk [vmem:[#allocation4] sm:$0xff] %vm15_vm0, %v142_v4  ;;  %21 = vst.msk [vmem:[#allocation4 + $0x8] sm:$0xff] %vm15_vm0, %v142_v4  ;;  %v27_v16 = vand.u32 127, %v26_v15  ;;  %vm109_vm3 = vcmp.ne.s32.totalorder %v173_v5, 4294967196  ;;  %vm110_vm4 = vcmp.ne.s32.totalorder %v181_v14, 4294967196 }
   0x6   :  { %56 = vmax.xlane.f32.xlu0 %v23_v2 }
   0x8   :  { %v52_v6 = vld [vmem:[#allocation2] sm:$0xff]  ;;  %v53_v9 = vld [vmem:[#allocation2 + $0x8] sm:$0xff] }
   0x9   :  { %v82_v35 = vld [vmem:[#allocation3] sm:$0xff]  ;;  %v83_v39 = vld [vmem:[#allocation3 + $0x8] sm:$0xff] }
   0xa   :  { %v39_v29 = vld [vmem:[#allocation4] sm:$0xff]  ;;  %v40_v44 = vld [vmem:[#allocation4 + $0x8] sm:$0xff] }
  0x1c   :  { %32 = vperm.xlu0 %127, %v173_v5  }
  0x8b   :  { %v55_v7 = vpop.xlane.xlu0 %54 }
  0x8c   :  { %v58_v8 = vmax.f32 %v52_v6, %v55_v7 }
  0x8e   :  { %v60_v10 = vsub.f32 %v52_v6, %v58_v8  ;;  %94 = vst.msk [vmem:[#allocation2] sm:$0xff] %vm15_vm0, %v58_v8  ;;  %68 = vperm.xlu1 %126, %v58_v8  }
  0x8f   :  { %v57_v11 = vpop.xlane.xlu0 %56 }
  0x90   :  { %v59_v12 = vmax.f32 %v53_v9, %v57_v11  ;;  %v62_v32 = vmul.f32 1.442695, %v60_v10 }
  0x92   :  { %v61_v13 = vsub.f32 %v53_v9, %v59_v12  ;;  %95 = vst.msk [vmem:[#allocation2 + $0x8] sm:$0xff] %vm15_vm0, %v59_v12  ;;  %73 = vperm.xlu1 %126, %v59_v12  }
  0x94   :  { %v64_v33 = vmul.f32 1.442695, %v61_v13 }
  0x95   :  { %v99_v51 = vld [vmem:[#allocation2] sm:$0xff] }
  0x96   :  { %35 = vperm.xlu1 %126, %v181_v14  }
  0x97   :  { %v33_v17 = vpop.permute.xlu0 %32 }
  0x98   :  { %vm37_vm1 = vcmp.eq.s32.totalorder %v27_v16, %v33_v17 }
  0x99   :  { %v41_v18 = vsel %vm37_vm1, %v22_v0, 0.0  ;;  %v100_v57 = vld [vmem:[#allocation2 + $0x8] sm:$0xff] }
  0x9a   :  { %43 = vadd.xlane.f32.xlu0 %v41_v18 }
 0x109   :  { %v69_v19 = vpop.permute.xlu1 %68 }
 0x10a   :  { %v76_v20 = vsub.f32 %v22_v0, %v69_v19 }
 0x10c   :  { %v78_v21 = vmul.f32 1.442695, %v76_v20 }
 0x10d   :  { %v74_v22 = vpop.permute.xlu1 %73 }
 0x10e   :  { %128 = vpow2.f32 %v78_v21  ;;  %v77_v23 = vsub.f32 %v23_v2, %v74_v22 }
 0x110   :  { %v80_v24 = vmul.f32 1.442695, %v77_v23 }
 0x111   :  { %v36_v26 = vpop.permute.xlu1 %35 }
 0x112   :  { %130 = vpow2.f32 %v80_v24  ;;  %vm38_vm2 = vcmp.eq.s32.totalorder %v27_v16, %v36_v26 }
 0x113   :  { %v42_v28 = vsel %vm38_vm2, %v23_v2, 0.0  ;;  %132 = vpow2.f32 %v62_v32 }
 0x114   :  { %134 = vpow2.f32 %v64_v33 }
 0x11b   :  { %v129_v25 = vpop.eup %128 }
 0x11c   :  { %86 = vadd.xlane.f32.xlu1 %v129_v25 }
 0x11f   :  { %v131_v27 = vpop.eup %130 }
 0x120   :  { %88 = vadd.xlane.f32.xlu1 %v131_v27  ;;  %v133_v34 = vpop.eup %132 }
 0x121   :  { %v84_v36 = vmul.f32 %v133_v34, %v82_v35  ;;  %v135_v37 = vpop.eup %134 }
 0x122   :  { %v85_v41 = vmul.f32 %v135_v37, %v83_v39 }
 0x123   :  { %v44_v30 = vpop.xlane.xlu0 %43 }
 0x124   :  { %45 = vadd.xlane.f32.xlu1 %v42_v28  ;;  %v47_v31 = vadd.f32 %v44_v30, %v39_v29 }
 0x126   :  { %50 = vst.msk [vmem:[#allocation4] sm:$0xff] %vm15_vm0, %v47_v31 }
 0x12d   :  { %v111_v52 = vld [vmem:[#allocation4] sm:$0xff] }
 0x1a5   :  { %v87_v38 = vpop.xlane.xlu1 %86 }
 0x1a6   :  { %v90_v40 = vadd.f32 %v87_v38, %v84_v36 }
 0x1a8   :  { %92 = vst.msk [vmem:[#allocation3] sm:$0xff] %vm15_vm0, %v90_v40 }
 0x1a9   :  { %v89_v42 = vpop.xlane.xlu1 %88 }
 0x1aa   :  { %v91_v43 = vadd.f32 %v89_v42, %v85_v41 }
 0x1ac   :  { %93 = vst.msk [vmem:[#allocation3 + $0x8] sm:$0xff] %vm15_vm0, %v91_v43 }
 0x1ad   :  { %v46_v45 = vpop.xlane.xlu1 %45 }
 0x1ae   :  { %v48_v46 = vadd.f32 %v46_v45, %v40_v44 }
 0x1af   :  { %v101_v47 = vld [vmem:[#allocation3] sm:$0xff] }
 0x1b0   :  { %136 = vlog2.f32 %v101_v47  ;;  %51 = vst.msk [vmem:[#allocation4 + $0x8] sm:$0xff] %vm15_vm0, %v48_v46 }
 0x1b3   :  { %v102_v48 = vld [vmem:[#allocation3 + $0x8] sm:$0xff] }
 0x1b4   :  { %138 = vlog2.f32 %v102_v48 }
 0x1b7   :  { %v112_v60 = vld [vmem:[#allocation4 + $0x8] sm:$0xff] }
 0x1bd   :  { %v137_v49 = vpop.eup %136 }
 0x1be   :  { %v104_v50 = vmul.f32 0.6931472, %v137_v49 }
 0x1c0   :  { %v107_v53 = vadd.f32 %v104_v50, %v99_v51 }
 0x1c1   :  { %v139_v54 = vpop.eup %138 }
 0x1c2   :  { %v106_v55 = vmul.f32 0.6931472, %v139_v54  ;;  %v113_v56 = vsub.f32 %v107_v53, %v111_v52 }
 0x1c4   :  { %v108_v58 = vadd.f32 %v106_v55, %v100_v57  ;;  %v115_v59 = vsel %vm109_vm3, %v113_v56, 0.0 }
 0x1c5   :  { %117 = vst.msk [vmem:[%s200_s2] sm:$0xff] %vm15_vm0, %v115_v59 }
 0x1c6   :  { %v114_v61 = vsub.f32 %v108_v58, %v112_v60 }
 0x1c8   :  { %v116_v62 = vsel %vm110_vm4, %v114_v61, 0.0 }
 0x1c9   :  { %118 = vst.msk [vmem:[%s200_s2 + $0x8] sm:$0xff] %vm15_vm0, %v116_v62 }

</bundles_post_ra>
